<compile_context>
chip_gen: v6e
topology: v6e:2x2x1
jax: 0.10.0
libtpu: 0.0.40
codegen_flags: <defaults>
</compile_context>

<pallas_src>
import jax
import jax.numpy as jnp
from jax.experimental import pallas as pl
from jax.experimental.pallas import tpu as pltpu

LANES = 128
SUBLANES = 8              # f32 minimum sublane tile
MAX_TILE_ROWS = 4096      # (4096,128) f32 block = 2 MiB; 4 pipelined bufs = 8 MiB
SMALL_N_BYPASS = 1 << 16  # below this many elements, plain fused jnp wins


def _round_up(a, b):
    return ((a + b - 1) // b) * b


def square_model_kernel(w1_ref, w2_ref, b2_ref, x_ref, o_ref):
    # w1_ref, w2_ref, b2_ref: (1, 1) scalars in SMEM
    # x_ref, o_ref:           (tile_rows, 128) lane-dense tiles in VMEM
    w1 = w1_ref[0, 0]
    w2 = w2_ref[0, 0]
    b2 = b2_ref[0, 0]
    c = (w1 * w1) * w2            # scalar fold: ((x*w1)^2)*w2 == (x*x)*c
    x = x_ref[...]
    o_ref[...] = (x * x) * c + b2


def _pallas_elementwise(x2d, w1, w2, b2, tile_rows):
    rows = x2d.shape[0]
    grid = (pl.cdiv(rows, tile_rows),)   # ragged final block masked by Pallas
    return pl.pallas_call(
        square_model_kernel,
        out_shape=jax.ShapeDtypeStruct(x2d.shape, x2d.dtype),
        grid=grid,
        in_specs=[
            pl.BlockSpec(memory_space=pltpu.MemorySpace.SMEM),      # w1
            pl.BlockSpec(memory_space=pltpu.MemorySpace.SMEM),      # w2
            pl.BlockSpec(memory_space=pltpu.MemorySpace.SMEM),      # b2
            pl.BlockSpec((tile_rows, LANES), lambda i: (i, 0)),     # x
        ],
        out_specs=pl.BlockSpec((tile_rows, LANES), lambda i: (i, 0)),
        compiler_params=pltpu.CompilerParams(
            dimension_semantics=("parallel",)),
    )(w1, w2, b2, x2d)


def square_model_forward(x, w1, w2, b2, *, force_pallas=False):
    """x: (N, 1) f32; w1, w2, b2: (1, 1) f32 params. Returns (N, 1) f32."""
    n = x.shape[0]

    # ---- small-N bypass: launch/pad overhead dominates, let XLA fuse it ----
    if not force_pallas and n < SMALL_N_BYPASS:
        c = (w1[0, 0] * w1[0, 0]) * w2[0, 0]
        return (x * x) * c + b2[0, 0]

    rows_needed = pl.cdiv(n, LANES)
    # >=2 grid steps (v7x: feed both TensorCores), rows multiple of 8 sublanes,
    # block capped at 2 MiB so the 4-buffer pipeline fits every generation's
    # default scoped VMEM without flags.
    tile_rows = max(
        SUBLANES,
        min(MAX_TILE_ROWS, _round_up(pl.cdiv(rows_needed, 2), SUBLANES)),
    )

    x_flat = x.reshape(-1)

    if n % LANES == 0:
        # Fast path: lane-dense repack is a row-major reshape -> zero-copy.
        x2d = x_flat.reshape(rows_needed, LANES)
        out2d = _pallas_elementwise(x2d, w1, w2, b2, tile_rows)
        return out2d.reshape(n, 1)

    # Ragged tail: pad only to the next multiple of 128 lanes (<=127 elements).
    # TODO(synk): for ragged N the pad/slice still cost extra HBM round trips;
    # a manual-DMA tail block would remove them, not worth it for this op.
    padded = rows_needed * LANES
    x2d = jnp.pad(x_flat, (0, padded - n)).reshape(rows_needed, LANES)
    out2d = _pallas_elementwise(x2d, w1, w2, b2, tile_rows)
    return out2d.reshape(-1)[:n].reshape(n, 1)


if __name__ == "__main__":
    key = jax.random.PRNGKey(0)
    kx, k1, k2, k3 = jax.random.split(key, 4)

    # Deterministic parameter init (shapes from __init__: two 1x1 Linears)
    w1 = jax.random.normal(k1, (1, 1), dtype=jnp.float32)   # layer_1.weight
    w2 = jax.random.normal(k2, (1, 1), dtype=jnp.float32)   # layer_2.weight
    b2 = jax.random.normal(k3, (1, 1), dtype=jnp.float32)   # layer_2.bias

    def ref_fn(xx):
        y1 = (xx @ w1.T) * (xx @ w1.T)
        return y1 @ w2.T + b2[0, 0]

    # 1) Small batch (module-scale): fused-jnp bypass AND forced Pallas path.
    x_small = jax.random.normal(kx, (8, 1), dtype=jnp.float32)
    out_bypass = jax.block_until_ready(square_model_forward(x_small, w1, w2, b2))
    out_pallas = jax.block_until_ready(
        square_model_forward(x_small, w1, w2, b2, force_pallas=True))
    ref_small = ref_fn(x_small)
    assert out_bypass.shape == (8, 1) and out_pallas.shape == (8, 1)
    assert jnp.allclose(out_bypass, ref_small, atol=1e-6, rtol=1e-6)
    assert jnp.allclose(out_pallas, ref_small, atol=1e-6, rtol=1e-6)

    # 2) Large lane-aligned batch: zero-copy Pallas path, grid of 2 blocks.
    n_aligned = 1024 * LANES            # 131072 elements
    x_big = jax.random.normal(kx, (n_aligned, 1), dtype=jnp.float32)
    out_big = jax.block_until_ready(square_model_forward(x_big, w1, w2, b2))
    assert out_big.shape == (n_aligned, 1)
    assert jnp.allclose(out_big, ref_fn(x_big), atol=1e-5, rtol=1e-5)

    # 3) Large ragged batch: tail-only (<=127 elem) padding + masked last block.
    n_ragged = n_aligned + 77
    x_rag = jax.random.normal(kx, (n_ragged, 1), dtype=jnp.float32)
    out_rag = jax.block_until_ready(square_model_forward(x_rag, w1, w2, b2))
    assert out_rag.shape == (n_ragged, 1)
    assert jnp.allclose(out_rag, ref_fn(x_rag), atol=1e-5, rtol=1e-5)

    print("KERNEL_OK")
</pallas_src>

<mosaic_0001>
module attributes {stable_mosaic.version = 11 : i64} {
  func.func @square_model_kernel(%arg0: i32, %arg1: memref<1x1xf32, #tpu.memory_space<smem>>, %arg2: memref<1x1xf32, #tpu.memory_space<smem>>, %arg3: memref<1x1xf32, #tpu.memory_space<smem>>, %arg4: memref<8x128xf32, #tpu.memory_space<vmem>>, %arg5: memref<8x128xf32, #tpu.memory_space<vmem>>) attributes {dimension_semantics = [#tpu.dimension_semantics<parallel>], iteration_bounds = array<i64: 1>, scalar_prefetch = 0 : i64, scratch_operands = 0 : i64, tpu.core_type = #tpu.core_type<tc>, window_params = [{transform_indices = @transform_0, window_bounds = array<i64: 1, 1>}, {transform_indices = @transform_1, window_bounds = array<i64: 1, 1>}, {transform_indices = @transform_2, window_bounds = array<i64: 1, 1>}, {transform_indices = @transform_3, window_bounds = array<i64: 8, 128>}, {transform_indices = @transform_4, window_bounds = array<i64: 8, 128>}]} {
    %c0 = arith.constant 0 : index
    %c0_0 = arith.constant 0 : index
    %0 = memref.load %arg1[%c0, %c0_0] : memref<1x1xf32, #tpu.memory_space<smem>>
    %c0_1 = arith.constant 0 : index
    %c0_2 = arith.constant 0 : index
    %1 = memref.load %arg2[%c0_1, %c0_2] : memref<1x1xf32, #tpu.memory_space<smem>>
    %c0_3 = arith.constant 0 : index
    %c0_4 = arith.constant 0 : index
    %2 = memref.load %arg3[%c0_3, %c0_4] : memref<1x1xf32, #tpu.memory_space<smem>>
    %3 = arith.mulf %0, %0 : f32
    %4 = arith.mulf %3, %1 : f32
    %c0_5 = arith.constant 0 : index
    %c0_6 = arith.constant 0 : index
    %5 = vector.load %arg4[%c0_5, %c0_6] : memref<8x128xf32, #tpu.memory_space<vmem>>, vector<8x128xf32>
    %6 = arith.mulf %5, %5 : vector<8x128xf32>
    %7 = vector.broadcast %4 : f32 to vector<8x128xf32>
    %8 = arith.mulf %6, %7 : vector<8x128xf32>
    %9 = vector.broadcast %2 : f32 to vector<8x128xf32>
    %10 = arith.addf %8, %9 : vector<8x128xf32>
    %c0_7 = arith.constant 0 : index
    %c0_8 = arith.constant 0 : index
    %11 = vector.load %arg5[%c0_7, %c0_8] : memref<8x128xf32, #tpu.memory_space<vmem>>, vector<8x128xf32>
    tpu.vector_store %arg5[%c0_7, %c0_8], %10 {strides = array<i32>} : memref<8x128xf32, #tpu.memory_space<vmem>>, vector<8x128xf32>,
    return
  }
  func.func @transform_0(%arg0: i32) -> (i32, i32) {
    %c0_i32 = arith.constant 0 : i32
    %c0_i32_0 = arith.constant 0 : i32
    %c0_i32_1 = arith.constant 0 : i32
    return %c0_i32, %c0_i32_0 : i32, i32
  }
  func.func @transform_1(%arg0: i32) -> (i32, i32) {
    %c0_i32 = arith.constant 0 : i32
    %c0_i32_0 = arith.constant 0 : i32
    %c0_i32_1 = arith.constant 0 : i32
    return %c0_i32, %c0_i32_0 : i32, i32
  }
  func.func @transform_2(%arg0: i32) -> (i32, i32) {
    %c0_i32 = arith.constant 0 : i32
    %c0_i32_0 = arith.constant 0 : i32
    %c0_i32_1 = arith.constant 0 : i32
    return %c0_i32, %c0_i32_0 : i32, i32
  }
  func.func @transform_3(%arg0: i32) -> (i32, i32) {
    %c0_i32 = arith.constant 0 : i32
    %c0_i32_0 = arith.constant 0 : i32
    return %arg0, %c0_i32 : i32, i32
  }
  func.func @transform_4(%arg0: i32) -> (i32, i32) {
    %c0_i32 = arith.constant 0 : i32
    %c0_i32_0 = arith.constant 0 : i32
    return %arg0, %c0_i32 : i32, i32
  }
}

</mosaic_0001>

<bundles_post_ra>
// kernel: tpu_custom_call.1
= control target key start
LH: loop header
LB: loop body
LE: loop exit
PB: predicated region body
PF: predicated region fallthrough
CT: control target
= control target key end

     0   :  { %12 = vsyncpa [#allocation6], 0  ;;  %s118_s0 = inlined_call_operand.<no memory space> [shape: f32[1,1], index: 0, kind: input, shape index: {}]   ;;  %s119_s1 = inlined_call_operand.<no memory space> [shape: f32[1,1], index: 1, kind: input, shape index: {}]   ;;  %s120_s2 = inlined_call_operand.<no memory space> [shape: f32[1,1], index: 2, kind: input, shape index: {}]   ;;  %s121_s3 = inlined_call_operand.vmem [shape: f32[1,128], index: 3, kind: input, shape index: {}]   ;;  %s122_s4 = inlined_call_operand.hbm [shape: f32[1,128], index: 4, kind: output, shape index: {}]  }
   0x1   :  { %s24_s17 = smul.f32 %s118_s0, %s118_s0  ;;  %v26_v0 = vld [vmem:[%s121_s3] sm:$0xff]  ;;  %v30_v3 = vstv %s120_s2 }
   0x2   :  { %v27_v1 = vmul.f32 %v26_v0, %v26_v0 }
   0x3   :  { %s25_s22 = smul.f32 %s24_s17, %s119_s1 }
   0x5   :  { %v28_v2 = vstv %s25_s22 }
   0x6   :  { %v29_v4 = vmul.f32 %v28_v2, %v27_v1 }
   0x8   :  { %v31_v5 = vadd.f32 %v30_v3, %v29_v4 }
   0xa   :  { %32 = vst [vmem:[#allocation5] sm:$0xff] %v31_v5 }
   0xb   :  { %37 = vsyncadd [#allocation6], 112  ;;  %s74_s25 = smov [#allocation5]  }
   0xc   :  { %s38_s0 = sshll.u32 %s74_s25, 4  ;;  %s39_s0 = int_to_ptr.vmem [resolvable:$true] %s38_s0 }
   0xd   :  { %s52_s26 = scalar_lea.vmem %s39_s0, 16  ;;  %s56_s3 = scalar_lea.vmem %s39_s0, 128 }
   0xe   :  { %p53_p0 = scmp.ne.s32.totalorder %s39_s0, %s52_s26  ;;  %p57_p1 = scmp.lt.s32.totalorder %s39_s0, %s39_s0 }
   0xf   :  { %p58_p2 = scmp.lt.s32.totalorder %s56_s3, %s52_s26 }
  0x11   :  { %p59_p3 = por %p58_p2, %p57_p1 }
  0x13   :  { %p60_p4 = pnand %p59_p3, %p53_p0 }
  0x15   :  { %63 = shalt.err (!%p60_p4)
}
  0x16   :  { %s75_s1 = smov 16   ;;  %s76_s27 = smov 1  }
  0x17   :  { %44 = dma.vmem_to_hbm [thread:$0]  %s39_s0, 16, %s122_s4, [#allocation6], %s75_s1, %s75_s1, %s76_s27  }
  0x18   :  { %72 = dma.done.wait [#allocation6], 128  }
  0x19   :  { %73 = vsyncadd [#allocation6], 4294967168 }
  0x1a   :  { %48 = vsyncpa [#allocation6], 1 }

</bundles_post_ra>
